<compile_context>
chip_gen: v7x
topology: tpu7x:2x2x1
jax: 0.10.0
libtpu: 0.0.40
codegen_flags: <defaults>
</compile_context>

<pallas_src>
import jax
import jax.numpy as jnp
import numpy as np
from jax.experimental import pallas as pl
from jax.experimental.pallas import tpu as pltpu

_LANE = 128        # lane width (fast axis)
_BLOCK_ROWS = 32   # 32 rows x 128 lanes = 4096 points per grid step


def _gaus2d_kernel(p_ref, c_ref, o_ref):
    # p_ref: (6, BR, 128)  rows = [x, y, rot_a_n, rot_b_n, inv_var_x, inv_var_y]
    # c_ref: (2, BR, 128)  rows = [coord_x, coord_y]
    # o_ref: (BR, 128)
    x         = p_ref[0]
    y         = p_ref[1]
    rot_a     = p_ref[2]
    rot_b     = p_ref[3]
    inv_var_x = p_ref[4]
    inv_var_y = p_ref[5]

    dx = c_ref[0] - x
    dy = c_ref[1] - y

    x_rot = rot_a * dx - rot_b * dy
    y_rot = rot_b * dx + rot_a * dy

    z = x_rot * x_rot * inv_var_x + y_rot * y_rot * inv_var_y
    o_ref[...] = jnp.exp(-0.5 * z)


def complex_gaus2d(inp, coordinates, seq_lengths):
    """JAX/Pallas equivalent of ComplexGaus2D.forward."""
    assert inp.shape[1] == 6
    assert coordinates.shape[1] == 2
    G = inp.shape[0]
    N = coordinates.shape[0]

    # --- per-group preprocessing (G << N, cheap in the wrapper) -------------
    inp_f = inp.astype(jnp.float32)
    gx, gy = inp_f[:, 0], inp_f[:, 1]
    std_x = jnp.clip(inp_f[:, 2], 1e-8)
    std_y = jnp.clip(inp_f[:, 3], 1e-8)
    rot_a, rot_b = inp_f[:, 4], inp_f[:, 5]
    scale = jnp.sqrt(jnp.clip(rot_a * rot_a + rot_b * rot_b, 1e-16))
    rot_a = rot_a / scale
    rot_b = rot_b / scale
    inv_var_x = 1.0 / (std_x * std_x)
    inv_var_y = 1.0 / (std_y * std_y)
    pre = jnp.stack([gx, gy, rot_a, rot_b, inv_var_x, inv_var_y], axis=1)  # [G, 6]

    # Glue: repeat_interleave == gather by group id (total length N is static).
    # TODO(synk): for contiguous runs this gather could be replaced by scalar-
    # prefetched per-block group offsets to avoid streaming 24 B/point params.
    row_ids = jnp.repeat(jnp.arange(G), seq_lengths, total_repeat_length=N)
    params = jnp.take(pre, row_ids, axis=0)                                # [N, 6]

    # --- layout: feature-major, point axis as [R, 128] tiles ----------------
    block_pts = _BLOCK_ROWS * _LANE
    n_pad = ((N + block_pts - 1) // block_pts) * block_pts
    r_total = n_pad // _LANE

    p_t = (jnp.zeros((6, n_pad), jnp.float32)
           .at[:, :N].set(params.T)
           .reshape(6, r_total, _LANE))
    c_t = (jnp.zeros((2, n_pad), jnp.float32)
           .at[:, :N].set(coordinates.astype(jnp.float32).T)
           .reshape(2, r_total, _LANE))

    grid = (r_total // _BLOCK_ROWS,)
    out = pl.pallas_call(
        _gaus2d_kernel,
        out_shape=jax.ShapeDtypeStruct((r_total, _LANE), jnp.float32),
        grid_spec=pltpu.PrefetchScalarGridSpec(
            num_scalar_prefetch=0,
            grid=grid,
            in_specs=[
                pl.BlockSpec((6, _BLOCK_ROWS, _LANE), lambda i: (0, i, 0)),
                pl.BlockSpec((2, _BLOCK_ROWS, _LANE), lambda i: (0, i, 0)),
            ],
            out_specs=pl.BlockSpec((_BLOCK_ROWS, _LANE), lambda i: (i, 0)),
        ),
        compiler_params=pltpu.CompilerParams(
            dimension_semantics=("parallel",)),
    )(p_t, c_t)

    return out.reshape(n_pad)[:N][:, None]                                 # [N, 1]


def _reference(inp, coordinates, seq_lengths):
    """Pure numpy reference mirroring the PyTorch sparse_gaus2d."""
    inp = np.asarray(inp, np.float32)
    coords = np.asarray(coordinates, np.float32)
    reps = np.asarray(seq_lengths)
    params = np.repeat(inp, reps, axis=0)
    x, y, std_x, std_y, rot_a, rot_b = np.split(params, 6, axis=-1)
    scale = np.sqrt(np.clip(rot_a ** 2 + rot_b ** 2, 1e-16, None))
    rot_a = rot_a / scale
    rot_b = rot_b / scale
    std_x = np.clip(std_x, 1e-8, None)
    std_y = np.clip(std_y, 1e-8, None)
    dx = coords[:, 0:1] - x
    dy = coords[:, 1:2] - y
    x_rot = rot_a * dx - rot_b * dy
    y_rot = rot_b * dx + rot_a * dy
    z_x = x_rot ** 2 / std_x ** 2
    z_y = y_rot ** 2 / std_y ** 2
    return np.exp(-(z_x + z_y) / 2)


if __name__ == "__main__":
    key = jax.random.PRNGKey(0)
    k1, k2 = jax.random.split(key)

    G = 4
    seq_lengths = jnp.array([3, 5, 4, 4], dtype=jnp.int32)   # sums to N=16
    N = int(np.sum(np.asarray(seq_lengths)))

    inp = jax.random.normal(k1, (G, 6), dtype=jnp.float32)
    # keep stds positive-ish so the output isn't all ~0 (semantics unchanged)
    inp = inp.at[:, 2:4].set(jnp.abs(inp[:, 2:4]) + 0.5)
    coordinates = jax.random.uniform(k2, (N, 2), dtype=jnp.float32)

    out = complex_gaus2d(inp, coordinates, seq_lengths)
    out = jax.block_until_ready(out)

    ref = _reference(inp, coordinates, seq_lengths)
    assert out.shape == (N, 1), out.shape
    np.testing.assert_allclose(np.asarray(out), ref, rtol=1e-5, atol=1e-5)

    print("KERNEL_OK")
</pallas_src>

<mosaic_0001>
module attributes {stable_mosaic.version = 11 : i64} {
  func.func @_gaus2d_kernel(%arg0: i32, %arg1: memref<6x32x128xf32, #tpu.memory_space<vmem>>, %arg2: memref<2x32x128xf32, #tpu.memory_space<vmem>>, %arg3: memref<32x128xf32, #tpu.memory_space<vmem>>) attributes {dimension_semantics = [#tpu.dimension_semantics<parallel>], iteration_bounds = array<i64: 1>, scalar_prefetch = 0 : i64, scratch_operands = 0 : i64, tpu.core_type = #tpu.core_type<tc>, window_params = [{transform_indices = @transform_0, window_bounds = array<i64: 6, 32, 128>}, {transform_indices = @transform_1, window_bounds = array<i64: 2, 32, 128>}, {transform_indices = @transform_2, window_bounds = array<i64: 32, 128>}]} {
    %c0 = arith.constant 0 : index
    %c0_0 = arith.constant 0 : index
    %c0_1 = arith.constant 0 : index
    %0 = vector.load %arg1[%c0, %c0_0, %c0_1] : memref<6x32x128xf32, #tpu.memory_space<vmem>>, vector<1x32x128xf32>
    %1 = vector.shape_cast %0 : vector<1x32x128xf32> to vector<32x128xf32>
    %c1 = arith.constant 1 : index
    %c0_2 = arith.constant 0 : index
    %c0_3 = arith.constant 0 : index
    %2 = vector.load %arg1[%c1, %c0_2, %c0_3] : memref<6x32x128xf32, #tpu.memory_space<vmem>>, vector<1x32x128xf32>
    %3 = vector.shape_cast %2 : vector<1x32x128xf32> to vector<32x128xf32>
    %c2 = arith.constant 2 : index
    %c0_4 = arith.constant 0 : index
    %c0_5 = arith.constant 0 : index
    %4 = vector.load %arg1[%c2, %c0_4, %c0_5] : memref<6x32x128xf32, #tpu.memory_space<vmem>>, vector<1x32x128xf32>
    %5 = vector.shape_cast %4 : vector<1x32x128xf32> to vector<32x128xf32>
    %c3 = arith.constant 3 : index
    %c0_6 = arith.constant 0 : index
    %c0_7 = arith.constant 0 : index
    %6 = vector.load %arg1[%c3, %c0_6, %c0_7] : memref<6x32x128xf32, #tpu.memory_space<vmem>>, vector<1x32x128xf32>
    %7 = vector.shape_cast %6 : vector<1x32x128xf32> to vector<32x128xf32>
    %c4 = arith.constant 4 : index
    %c0_8 = arith.constant 0 : index
    %c0_9 = arith.constant 0 : index
    %8 = vector.load %arg1[%c4, %c0_8, %c0_9] : memref<6x32x128xf32, #tpu.memory_space<vmem>>, vector<1x32x128xf32>
    %9 = vector.shape_cast %8 : vector<1x32x128xf32> to vector<32x128xf32>
    %c5 = arith.constant 5 : index
    %c0_10 = arith.constant 0 : index
    %c0_11 = arith.constant 0 : index
    %10 = vector.load %arg1[%c5, %c0_10, %c0_11] : memref<6x32x128xf32, #tpu.memory_space<vmem>>, vector<1x32x128xf32>
    %11 = vector.shape_cast %10 : vector<1x32x128xf32> to vector<32x128xf32>
    %c0_12 = arith.constant 0 : index
    %c0_13 = arith.constant 0 : index
    %c0_14 = arith.constant 0 : index
    %12 = vector.load %arg2[%c0_12, %c0_13, %c0_14] : memref<2x32x128xf32, #tpu.memory_space<vmem>>, vector<1x32x128xf32>
    %13 = vector.shape_cast %12 : vector<1x32x128xf32> to vector<32x128xf32>
    %14 = arith.subf %13, %1 : vector<32x128xf32>
    %c1_15 = arith.constant 1 : index
    %c0_16 = arith.constant 0 : index
    %c0_17 = arith.constant 0 : index
    %15 = vector.load %arg2[%c1_15, %c0_16, %c0_17] : memref<2x32x128xf32, #tpu.memory_space<vmem>>, vector<1x32x128xf32>
    %16 = vector.shape_cast %15 : vector<1x32x128xf32> to vector<32x128xf32>
    %17 = arith.subf %16, %3 : vector<32x128xf32>
    %18 = arith.mulf %5, %14 : vector<32x128xf32>
    %19 = arith.mulf %7, %17 : vector<32x128xf32>
    %20 = arith.subf %18, %19 : vector<32x128xf32>
    %21 = arith.mulf %7, %14 : vector<32x128xf32>
    %22 = arith.mulf %5, %17 : vector<32x128xf32>
    %23 = arith.addf %21, %22 : vector<32x128xf32>
    %24 = arith.mulf %20, %20 : vector<32x128xf32>
    %25 = arith.mulf %24, %9 : vector<32x128xf32>
    %26 = arith.mulf %23, %23 : vector<32x128xf32>
    %27 = arith.mulf %26, %11 : vector<32x128xf32>
    %28 = arith.addf %25, %27 : vector<32x128xf32>
    %cst = arith.constant -5.000000e-01 : f32
    %29 = vector.broadcast %cst : f32 to vector<32x128xf32>
    %30 = arith.mulf %29, %28 : vector<32x128xf32>
    %31 = math.exp %30 : vector<32x128xf32>
    %c0_18 = arith.constant 0 : index
    %c0_19 = arith.constant 0 : index
    %32 = vector.load %arg3[%c0_18, %c0_19] : memref<32x128xf32, #tpu.memory_space<vmem>>, vector<32x128xf32>
    tpu.vector_store %arg3[%c0_18, %c0_19], %31 {strides = array<i32>} : memref<32x128xf32, #tpu.memory_space<vmem>>, vector<32x128xf32>,
    return
  }
  func.func @transform_0(%arg0: i32) -> (i32, i32, i32) {
    %c0_i32 = arith.constant 0 : i32
    %c0_i32_0 = arith.constant 0 : i32
    %c0_i32_1 = arith.constant 0 : i32
    return %c0_i32, %arg0, %c0_i32_0 : i32, i32, i32
  }
  func.func @transform_1(%arg0: i32) -> (i32, i32, i32) {
    %c0_i32 = arith.constant 0 : i32
    %c0_i32_0 = arith.constant 0 : i32
    %c0_i32_1 = arith.constant 0 : i32
    return %c0_i32, %arg0, %c0_i32_0 : i32, i32, i32
  }
  func.func @transform_2(%arg0: i32) -> (i32, i32) {
    %c0_i32 = arith.constant 0 : i32
    %c0_i32_0 = arith.constant 0 : i32
    return %arg0, %c0_i32 : i32, i32
  }
}

</mosaic_0001>

<bundles_post_ra>
// kernel: tpu_custom_call.1
= control target key start
LH: loop header
LB: loop body
LE: loop exit
PB: predicated region body
PF: predicated region fallthrough
CT: control target
= control target key end

     0   :  { %7 = vsyncpa [#allocation3], 0  ;;  %s314_s0 = inlined_call_operand.hbm [shape: f32[6,32,128], index: 0, kind: input, shape index: {}]   ;;  %s315_s1 = inlined_call_operand.hbm [shape: f32[2,32,128], index: 1, kind: input, shape index: {}]   ;;  %s316_s2 = inlined_call_operand.hbm [shape: f32[32,128], index: 2, kind: output, shape index: {}]  }
   0x1   :  { %8 = vsyncpa [#allocation6], 0 }
   0x2   :  { %9 = vsyncpa [#allocation4], 0  ;;  %s249_s9 = smov [#allocation2]   ;;  %s177_s13 = scalar_lea.hbm %s314_s0, 3072 }
   0x3   :  { %s15_s10 = sshll.u32 %s249_s9, 4  ;;  %p178_p0 = scmp.ne.s32.totalorder %s314_s0, %s177_s13  ;;  %s16_s10 = int_to_ptr.vmem [resolvable:$true] %s15_s10 }
   0x4   :  { %p181_p1 = scmp.lt.u32.totalorder %s177_s13, %s314_s0 }
   0x6   :  { %p183_p2 = pnand %p181_p1, %p178_p0 }
   0x8   :  { %186 = shalt.err (!%p183_p2)
}
   0x9   :  { %s187_s18 = scalar_lea.vmem %s16_s10, 3072  ;;  %p192_p4 = scmp.lt.s32.totalorder %s16_s10, %s16_s10 }
   0xa   :  { %p188_p3 = scmp.ne.s32.totalorder %s16_s10, %s187_s18  ;;  %p193_p5 = scmp.lt.s32.totalorder %s187_s18, %s187_s18 }
   0xc   :  { %p194_p6 = por %p193_p5, %p192_p4 }
   0xe   :  { %p195_p7 = pnand %p194_p6, %p188_p3 }
  0x10   :  { %198 = shalt.err (!%p195_p7)
}
  0x11   :  { %s250_s19 = smov 128   ;;  %s251_s20 = smov 8  }
  0x12   :  { %21 = dma.hbm_to_vmem [thread:$0]  %s314_s0, 3072, %s16_s10, [#allocation3], %s250_s19, %s250_s19, %s251_s20  }
  0x13   :  { %s252_s23 = smov [#allocation5]   ;;  %s199_s27 = scalar_lea.hbm %s315_s1, 1024 }
  0x14   :  { %s27_s24 = sshll.u32 %s252_s23, 4  ;;  %p200_p8 = scmp.ne.s32.totalorder %s315_s1, %s199_s27  ;;  %s28_s24 = int_to_ptr.vmem [resolvable:$true] %s27_s24 }
  0x15   :  { %p203_p9 = scmp.lt.u32.totalorder %s199_s27, %s315_s1 }
  0x17   :  { %p205_p10 = pnand %p203_p9, %p200_p8 }
  0x19   :  { %208 = shalt.err (!%p205_p10)
}
  0x1a   :  { %s209_s4 = scalar_lea.vmem %s28_s24, 1024  ;;  %p214_p12 = scmp.lt.s32.totalorder %s28_s24, %s28_s24 }
  0x1b   :  { %p210_p11 = scmp.ne.s32.totalorder %s28_s24, %s209_s4  ;;  %p215_p13 = scmp.lt.s32.totalorder %s209_s4, %s209_s4 }
  0x1d   :  { %p216_p0 = por %p215_p13, %p214_p12 }
  0x1f   :  { %p217_p1 = pnand %p216_p0, %p210_p11 }
  0x21   :  { %220 = shalt.err (!%p217_p1)
}
  0x22   :  { %33 = dma.hbm_to_vmem [thread:$0]  %s315_s1, 1024, %s28_s24, [#allocation6], %s250_s19, %s250_s19, %s251_s20  }
  0x23   :  { %243 = dma.done.wait [#allocation3], 3072  }
  0x24   :  { %244 = vsyncadd [#allocation3], 4294964224 }
  0x25   :  { %245 = dma.done.wait [#allocation6], 1024  }
  0x26   :  { %246 = vsyncadd [#allocation6], 4294966272  ;;  %v40_v0 = vld [vmem:[#allocation2] sm:$0xff]  ;;  %v41_v8 = vld [vmem:[#allocation2 + $0x8] sm:$0xff]  ;;  %s253_s1 = smov [#allocation7]  }
  0x27   :  { %v45_v1 = vld [vmem:[#allocation2 + $0x20] sm:$0xff]  ;;  %v46_v9 = vld [vmem:[#allocation2 + $0x28] sm:$0xff]  ;;  %v42_v20 = vld [vmem:[#allocation2 + $0x10] sm:$0xff]  ;;  %s151_s6 = sshll.u32 %s253_s1, 4  ;;  %s152_s6 = int_to_ptr.vmem [resolvable:$true] %s151_s6 }
  0x28   :  { %v50_v2 = vld [vmem:[#allocation2 + $0x40] sm:$0xff]  ;;  %v70_v10 = vld [vmem:[#allocation5 + $0x8] sm:$0xff]  ;;  %v47_v21 = vld [vmem:[#allocation2 + $0x30] sm:$0xff]  ;;  %s221_s7 = scalar_lea.vmem %s152_s6, 512  ;;  %p226_p3 = scmp.lt.s32.totalorder %s152_s6, %s152_s6 }
  0x29   :  { %v55_v3 = vld [vmem:[#allocation2 + $0x60] sm:$0xff]  ;;  %v51_v15 = vld [vmem:[#allocation2 + $0x48] sm:$0xff]  ;;  %v74_v18 = vsub.f32 %v70_v10, %v41_v8  ;;  %v71_v25 = vld [vmem:[#allocation5 + $0x10] sm:$0xff]  ;;  %p222_p2 = scmp.ne.s32.totalorder %s152_s6, %s221_s7  ;;  %p227_p4 = scmp.lt.s32.totalorder %s221_s7, %s221_s7 }
  0x2a   :  { %v69_v4 = vld [vmem:[#allocation5] sm:$0xff]  ;;  %v56_v16 = vld [vmem:[#allocation2 + $0x68] sm:$0xff]  ;;  %v80_v26 = vld [vmem:[#allocation5 + $0x30] sm:$0xff]  ;;  %v75_v36 = vsub.f32 %v71_v25, %v42_v20 }
  0x2b   :  { %v78_v5 = vld [vmem:[#allocation5 + $0x20] sm:$0xff]  ;;  %v73_v6 = vsub.f32 %v69_v4, %v40_v0  ;;  %v79_v17 = vld [vmem:[#allocation5 + $0x28] sm:$0xff]  ;;  %v87_v28 = vmul.f32 %v74_v18, %v51_v15  ;;  %v99_v30 = vmul.f32 %v74_v18, %v56_v16  ;;  %v52_v32 = vld [vmem:[#allocation2 + $0x50] sm:$0xff]  ;;  %v84_v37 = vsub.f32 %v80_v26, %v47_v21  ;;  %p228_p5 = por %p227_p4, %p226_p3 }
  0x2c   :  { %v82_v7 = vsub.f32 %v78_v5, %v45_v1  ;;  %v83_v19 = vsub.f32 %v79_v17, %v46_v9  ;;  %v60_v22 = vld [vmem:[#allocation2 + $0x80] sm:$0xff]  ;;  %v57_v33 = vld [vmem:[#allocation2 + $0x70] sm:$0xff]  ;;  %v43_v38 = vld [vmem:[#allocation2 + $0x18] sm:$0xff]  ;;  %v88_v48 = vmul.f32 %v75_v36, %v52_v32 }
  0x2d   :  { %v86_v11 = vmul.f32 %v73_v6, %v50_v2  ;;  %v98_v13 = vmul.f32 %v73_v6, %v55_v3  ;;  %v65_v27 = vld [vmem:[#allocation2 + $0xa0] sm:$0xff]  ;;  %v48_v41 = vld [vmem:[#allocation2 + $0x38] sm:$0xff]  ;;  %v61_v46 = vld [vmem:[#allocation2 + $0x88] sm:$0xff]  ;;  %v92_v49 = vmul.f32 %v84_v37, %v57_v33  ;;  %v100_v52 = vmul.f32 %v75_v36, %v57_v33  ;;  %p229_p6 = pnand %p228_p5, %p222_p2 }
  0x2e   :  { %v90_v12 = vmul.f32 %v82_v7, %v55_v3  ;;  %v102_v14 = vmul.f32 %v82_v7, %v50_v2  ;;  %v91_v29 = vmul.f32 %v83_v19, %v56_v16  ;;  %v103_v31 = vmul.f32 %v83_v19, %v51_v15  ;;  %v72_v42 = vld [vmem:[#allocation5 + $0x18] sm:$0xff]  ;;  %v66_v47 = vld [vmem:[#allocation2 + $0xa8] sm:$0xff]  ;;  %v62_v62 = vld [vmem:[#allocation2 + $0x90] sm:$0xff] }
  0x2f   :  { %v81_v43 = vld [vmem:[#allocation5 + $0x38] sm:$0xff]  ;;  %v104_v53 = vmul.f32 %v84_v37, %v52_v32  ;;  %v96_v57 = vsub.f32 %v88_v48, %v92_v49  ;;  %v76_v58 = vsub.f32 %v72_v42, %v43_v38  ;;  %v67_v1 = vld [vmem:[#allocation2 + $0xb0] sm:$0xff] }
  0x30   :  { %v94_v23 = vsub.f32 %v86_v11, %v90_v12  ;;  %v106_v24 = vadd.f32 %v102_v14, %v98_v13  ;;  %v95_v39 = vsub.f32 %v87_v28, %v91_v29  ;;  %v107_v40 = vadd.f32 %v103_v31, %v99_v30  ;;  %v53_v54 = vld [vmem:[#allocation2 + $0x58] sm:$0xff] }
  0x31   :  { %v58_v55 = vld [vmem:[#allocation2 + $0x78] sm:$0xff]  ;;  %v85_v59 = vsub.f32 %v81_v43, %v48_v41  ;;  %v108_v63 = vadd.f32 %v104_v53, %v100_v52  ;;  %v112_v2 = vmul.f32 %v96_v57, %v96_v57  ;;  %v89_v3 = vmul.f32 %v76_v58, %v53_v54 }
  0x32   :  { %v110_v34 = vmul.f32 %v94_v23, %v94_v23  ;;  %v118_v35 = vmul.f32 %v106_v24, %v106_v24  ;;  %v111_v50 = vmul.f32 %v95_v39, %v95_v39  ;;  %v119_v51 = vmul.f32 %v107_v40, %v107_v40  ;;  %v63_v14 = vld [vmem:[#allocation2 + $0x98] sm:$0xff] }
  0x33   :  { %v93_v4 = vmul.f32 %v85_v59, %v58_v55  ;;  %v120_v6 = vmul.f32 %v108_v63, %v108_v63  ;;  %v101_v7 = vmul.f32 %v76_v58, %v58_v55  ;;  %v105_v8 = vmul.f32 %v85_v59, %v53_v54  ;;  %v68_v16 = vld [vmem:[#allocation2 + $0xb8] sm:$0xff] }
  0x34   :  { %v114_v44 = vmul.f32 %v110_v34, %v60_v22  ;;  %v122_v45 = vmul.f32 %v118_v35, %v65_v27  ;;  %v115_v60 = vmul.f32 %v111_v50, %v61_v46  ;;  %v123_v61 = vmul.f32 %v119_v51, %v66_v47 }
  0x35   :  { %v116_v10 = vmul.f32 %v112_v2, %v62_v62  ;;  %v97_v11 = vsub.f32 %v89_v3, %v93_v4  ;;  %v124_v13 = vmul.f32 %v120_v6, %v67_v1  ;;  %v109_v15 = vadd.f32 %v105_v8, %v101_v7 }
  0x36   :  { %v126_v56 = vadd.f32 %v122_v45, %v114_v44  ;;  %v127_v5 = vadd.f32 %v123_v61, %v115_v60 }
  0x37   :  { %v113_v17 = vmul.f32 %v97_v11, %v97_v11  ;;  %v128_v19 = vadd.f32 %v124_v13, %v116_v10  ;;  %v121_v20 = vmul.f32 %v109_v15, %v109_v15 }
  0x38   :  { %v130_v0 = vmul.f32 -0.5, %v126_v56  ;;  %v131_v12 = vmul.f32 -0.5, %v127_v5 }
  0x39   :  { %v117_v21 = vmul.f32 %v113_v17, %v63_v14  ;;  %v132_v22 = vmul.f32 -0.5, %v128_v19  ;;  %v125_v23 = vmul.f32 %v121_v20, %v68_v16 }
  0x3a   :  { %v134_v9 = vmul.f32 1.442695, %v130_v0  ;;  %v136_v18 = vmul.f32 1.442695, %v131_v12 }
  0x3b   :  { %v138_v24 = vmul.f32 1.442695, %v132_v22  ;;  %v129_v25 = vadd.f32 %v125_v23, %v117_v21 }
  0x3c   :  { %169 = vpow2.f32 %v134_v9 }
  0x3d   :  { %171 = vpow2.f32 %v136_v18  ;;  %v133_v26 = vmul.f32 -0.5, %v129_v25 }
  0x3e   :  { %173 = vpow2.f32 %v138_v24 }
  0x3f   :  { %v140_v27 = vmul.f32 1.442695, %v133_v26 }
  0x41   :  { %175 = vpow2.f32 %v140_v27 }
  0x46   :  { %v170_v28 = vpop.eup %169 }
  0x47   :  { %142 = vst [vmem:[#allocation7] sm:$0xff] %v170_v28  ;;  %v172_v29 = vpop.eup %171 }
  0x48   :  { %143 = vst [vmem:[#allocation7 + $0x8] sm:$0xff] %v172_v29  ;;  %v174_v30 = vpop.eup %173 }
  0x49   :  { %144 = vst [vmem:[#allocation7 + $0x10] sm:$0xff] %v174_v30 }
  0x4b   :  { %v176_v31 = vpop.eup %175 }
  0x4c   :  { %145 = vst [vmem:[#allocation7 + $0x18] sm:$0xff] %v176_v31 }
  0x4d   :  { %232 = shalt.err (!%p229_p6)
}
  0x4e   :  { %s233_s10 = scalar_lea.hbm %s316_s2, 512 }
  0x4f   :  { %p234_p7 = scmp.ne.s32.totalorder %s316_s2, %s233_s10  ;;  %p237_p8 = scmp.lt.u32.totalorder %s233_s10, %s316_s2 }
  0x51   :  { %p239_p9 = pnand %p237_p8, %p234_p7 }
  0x53   :  { %242 = shalt.err (!%p239_p9)
}
  0x54   :  { %157 = dma.vmem_to_hbm [thread:$0]  %s152_s6, 512, %s316_s2, [#allocation4], %s250_s19, %s250_s19, %s251_s20  }
  0x55   :  { %247 = dma.done.wait [#allocation4], 512  }
  0x56   :  { %248 = vsyncadd [#allocation4], 4294966784 }
  0x57   :  { %161 = vsyncpa [#allocation3], 1 }
  0x58   :  { %162 = vsyncpa [#allocation6], 1 }
  0x59   :  { %163 = vsyncpa [#allocation4], 1 }

</bundles_post_ra>
